<compile_context>
chip_gen: v7x
topology: tpu7x:2x2x1
jax: 0.10.0
libtpu: 0.0.40
codegen_flags: <defaults>
</compile_context>

<pallas_src>
import functools

import jax
import jax.numpy as jnp
from jax.experimental import pallas as pl
from jax.experimental.pallas import tpu as pltpu

LANE = 128


def _round_up(x, m):
    return (x + m - 1) // m * m


def _pad2d(x, rows, cols):
    pr, pc = rows - x.shape[0], cols - x.shape[1]
    if pr == 0 and pc == 0:
        return x
    return jnp.pad(x, ((0, pr), (0, pc)))


def _pick_tk(n_pad, tm, tk_max):
    """Largest multiple of tm that divides n_pad and is <= max(tm, tk_max)."""
    tk = min(n_pad, max(tm, tk_max // tm * tm))
    while n_pad % tk:
        tk -= tm
    return tk


def _vmem_limit(buffer_bytes):
    # Headroom over the computed footprint; cap at 56 MiB so the config also
    # fits v7x's 64 MiB/TC (v5e/v6e have 128 MiB physical).
    return int(min(max(buffer_bytes + (8 << 20), 32 << 20), 56 << 20))


# ---------------------------------------------------------------------------
# Layer-1 kernel (fused):  XW2 = relu(A_hat @ XW1) @ W2
#   XW1 and W2 are VMEM-resident; A_hat streams as (tm, tk) tiles; f32 acc.
# ---------------------------------------------------------------------------
def _layer1_kernel(tk, a_ref, xw1_ref, w2_ref, o_ref, acc_ref):
    k = pl.program_id(1)

    @pl.when(k == 0)
    def _():
        acc_ref[...] = jnp.zeros_like(acc_ref)

    off = pl.multiple_of(k * tk, 128)
    acc_ref[...] += jnp.dot(
        a_ref[...], xw1_ref[pl.ds(off, tk), :],
        preferred_element_type=jnp.float32)

    @pl.when(k == pl.num_programs(1) - 1)
    def _():
        h = jnp.maximum(acc_ref[...], 0.0).astype(w2_ref.dtype)  # relu
        o_ref[...] = jnp.dot(
            h, w2_ref[...], preferred_element_type=jnp.float32
        ).astype(o_ref.dtype)


def layer1_agg(a_p, xw1_p, w2_p, *, tm, tk):
    n_pad, fh_pad = xw1_p.shape
    fo_pad = w2_p.shape[1]
    it = jnp.dtype(jnp.bfloat16).itemsize
    buf = (2 * tm * tk * it            # A tiles (double buffered)
           + 2 * n_pad * fh_pad * it   # resident XW1 (worst case 2 bufs)
           + 2 * fh_pad * fo_pad * it  # resident W2
           + 2 * tm * fo_pad * it      # output tiles
           + tm * fh_pad * 4)          # f32 accumulator
    return pl.pallas_call(
        functools.partial(_layer1_kernel, tk),
        out_shape=jax.ShapeDtypeStruct((n_pad, fo_pad), jnp.bfloat16),
        grid_spec=pltpu.PrefetchScalarGridSpec(
            num_scalar_prefetch=0,
            grid=(n_pad // tm, n_pad // tk),            # contraction axis last
            in_specs=[
                pl.BlockSpec((tm, tk), lambda i, k: (i, k)),          # A tile
                pl.BlockSpec((n_pad, fh_pad), lambda i, k: (0, 0)),   # XW1
                pl.BlockSpec((fh_pad, fo_pad), lambda i, k: (0, 0)),  # W2
            ],
            out_specs=pl.BlockSpec((tm, fo_pad), lambda i, k: (i, 0)),
            scratch_shapes=[pltpu.VMEM((tm, fh_pad), jnp.float32)],
        ),
        compiler_params=pltpu.CompilerParams(
            dimension_semantics=("parallel", "arbitrary"),
            vmem_limit_bytes=_vmem_limit(buf),
        ),
        cost_estimate=pl.CostEstimate(
            flops=2 * n_pad * n_pad * fh_pad + 2 * n_pad * fh_pad * fo_pad,
            transcendentals=0,
            bytes_accessed=(n_pad * n_pad + n_pad * fh_pad
                            + fh_pad * fo_pad + n_pad * fo_pad) * it,
        ),
    )(a_p, xw1_p, w2_p)


# ---------------------------------------------------------------------------
# Layer-2 kernel:  Z = log_softmax(A_hat @ XW2, dim=1)   (XW2 VMEM-resident)
# ---------------------------------------------------------------------------
def _layer2_kernel(tk, f_valid, a_ref, xw2_ref, o_ref, acc_ref):
    k = pl.program_id(1)

    @pl.when(k == 0)
    def _():
        acc_ref[...] = jnp.zeros_like(acc_ref)

    off = pl.multiple_of(k * tk, 128)
    acc_ref[...] += jnp.dot(
        a_ref[...], xw2_ref[pl.ds(off, tk), :],
        preferred_element_type=jnp.float32)

    @pl.when(k == pl.num_programs(1) - 1)
    def _():
        z = acc_ref[...]
        # log_softmax over the valid (unpadded) feature columns.  Masked
        # lanes are clamped to -inf BEFORE exp so junk lanes can never
        # overflow; they are sliced away in the wrapper.
        cols = jax.lax.broadcasted_iota(jnp.int32, z.shape, 1)
        valid = cols < f_valid
        zm = jnp.where(valid, z, -jnp.inf)
        m = jnp.max(zm, axis=1, keepdims=True)
        s = jnp.sum(jnp.exp(zm - m), axis=1, keepdims=True)
        o_ref[...] = (z - m - jnp.log(s)).astype(o_ref.dtype)


def layer2_agg(a_p, xw2_p, *, f_valid, tm, tk):
    n_pad, fo_pad = xw2_p.shape
    it = jnp.dtype(jnp.bfloat16).itemsize
    buf = (2 * tm * tk * it
           + 2 * n_pad * fo_pad * it
           + 2 * tm * fo_pad * 4
           + tm * fo_pad * 4)
    return pl.pallas_call(
        functools.partial(_layer2_kernel, tk, f_valid),
        out_shape=jax.ShapeDtypeStruct((n_pad, fo_pad), jnp.float32),
        grid_spec=pltpu.PrefetchScalarGridSpec(
            num_scalar_prefetch=0,
            grid=(n_pad // tm, n_pad // tk),
            in_specs=[
                pl.BlockSpec((tm, tk), lambda i, k: (i, k)),         # A tile
                pl.BlockSpec((n_pad, fo_pad), lambda i, k: (0, 0)),  # XW2
            ],
            out_specs=pl.BlockSpec((tm, fo_pad), lambda i, k: (i, 0)),
            scratch_shapes=[pltpu.VMEM((tm, fo_pad), jnp.float32)],
        ),
        compiler_params=pltpu.CompilerParams(
            dimension_semantics=("parallel", "arbitrary"),
            vmem_limit_bytes=_vmem_limit(buf),
        ),
        cost_estimate=pl.CostEstimate(
            flops=2 * n_pad * n_pad * fo_pad,
            transcendentals=n_pad * fo_pad,
            bytes_accessed=(n_pad * n_pad + n_pad * fo_pad) * it
            + n_pad * fo_pad * 4,
        ),
    )(a_p, xw2_p)


# ---------------------------------------------------------------------------
# Forward pass: conv1 -> relu -> conv2 -> log_softmax(dim=1)
# ---------------------------------------------------------------------------
def gnna_gin_forward(a_hat, x, w1, w2, *, tm=256, tk_max=2048):
    """GNNA_GIN.forward: log_softmax(A_hat @ (relu(A_hat @ (X @ W1)) @ W2))."""
    assert tm % 128 == 0
    n = a_hat.shape[0]
    f_out = w2.shape[1]

    n_pad = _round_up(n, tm)             # pad only to a row-tile multiple
    tk = _pick_tk(n_pad, tm, tk_max)
    fh_pad = _round_up(w1.shape[1], LANE)
    fo_pad = _round_up(f_out, LANE)

    # Stream the O(N^2) adjacency as bf16 (f32 accumulation on the MXU).
    a_p = _pad2d(a_hat, n_pad, n_pad).astype(jnp.bfloat16)

    # X @ W1 is tiny ((N,16)@(16,32)); plain XLA dot in the wrapper instead
    # of a grid-overhead-bound Pallas kernel.
    xw1 = jnp.dot(x.astype(jnp.float32), w1.astype(jnp.float32))
    xw1_p = _pad2d(xw1, n_pad, fh_pad).astype(jnp.bfloat16)
    w2_p = _pad2d(w2, fh_pad, fo_pad).astype(jnp.bfloat16)

    # Layer 1 (fused): XW2 = relu(A_hat @ XW1) @ W2   -- H never hits HBM.
    xw2_p = layer1_agg(a_p, xw1_p, w2_p, tm=tm, tk=tk)

    # Layer 2: log_softmax(A_hat @ XW2, dim=1)
    z = layer2_agg(a_p, xw2_p, f_valid=f_out, tm=tm, tk=tk)

    return z[:n, :f_out]


def _reference(a_hat, x, w1, w2):
    h = jnp.maximum(a_hat @ (x @ w1), 0.0)
    z = a_hat @ (h @ w2)
    return jax.nn.log_softmax(z, axis=1)


if __name__ == "__main__":
    # Small synthetic graph consistent with the module: N nodes (deliberately
    # not a tile multiple, to exercise padding), in=16, hidden=32, out=8.
    N, IN_FEATS, N_HIDDEN, OUT_FEATS = 192, 16, 32, 8

    key = jax.random.PRNGKey(0)
    k_adj, k_x, k_w1, k_w2 = jax.random.split(key, 4)

    # Dense symmetrically-normalized adjacency with self loops
    # (stands in for inputInfo.set_input()/set_hidden()).
    adj = (jax.random.uniform(k_adj, (N, N)) < 0.05).astype(jnp.float32)
    adj = jnp.maximum(adj, adj.T)                 # symmetrize
    adj = adj + jnp.eye(N, dtype=jnp.float32)     # self loops
    d_inv_sqrt = 1.0 / jnp.sqrt(jnp.sum(adj, axis=1))
    a_hat = adj * d_inv_sqrt[:, None] * d_inv_sqrt[None, :]

    x = jax.random.normal(k_x, (N, IN_FEATS), dtype=jnp.float32)
    w1 = jax.random.normal(k_w1, (IN_FEATS, N_HIDDEN), dtype=jnp.float32) * 0.1
    w2 = jax.random.normal(k_w2, (N_HIDDEN, OUT_FEATS), dtype=jnp.float32) * 0.1

    out = jax.block_until_ready(gnna_gin_forward(a_hat, x, w1, w2))

    ref = _reference(a_hat, x, w1, w2)
    assert out.shape == (N, OUT_FEATS)
    # bf16 streaming with f32 accumulation -> slightly loosened tolerance.
    assert jnp.allclose(out, ref, atol=2e-2, rtol=2e-2), "mismatch vs reference"

    print("KERNEL_OK")
</pallas_src>

<mosaic_0001>
module attributes {stable_mosaic.version = 11 : i64} {
  func.func @_layer1_kernel(%arg0: i32, %arg1: i32, %arg2: memref<256x256xbf16, #tpu.memory_space<vmem>>, %arg3: memref<256x128xbf16, #tpu.memory_space<vmem>>, %arg4: memref<128x128xbf16, #tpu.memory_space<vmem>>, %arg5: memref<256x128xbf16, #tpu.memory_space<vmem>>, %arg6: memref<256x128xf32, #tpu.memory_space<vmem>>) attributes {dimension_semantics = [#tpu.dimension_semantics<parallel>, #tpu.dimension_semantics<arbitrary>], iteration_bounds = array<i64: 1, 1>, scalar_prefetch = 0 : i64, scratch_operands = 1 : i64, tpu.core_type = #tpu.core_type<tc>, window_params = [{transform_indices = @transform_0, window_bounds = array<i64: 256, 256>}, {pipeline_mode = #tpu.pipeline_mode<synchronous>, transform_indices = @transform_1, window_bounds = array<i64: 256, 128>}, {pipeline_mode = #tpu.pipeline_mode<synchronous>, transform_indices = @transform_2, window_bounds = array<i64: 128, 128>}, {transform_indices = @transform_3, window_bounds = array<i64: 256, 128>}]} {
    %c0_i32 = arith.constant 0 : i32
    %0 = arith.cmpi eq, %arg1, %c0_i32 : i32
    %1 = arith.extui %0 : i1 to i32
    %c0_i32_0 = arith.constant 0 : i32
    %2 = arith.cmpi ne, %1, %c0_i32_0 : i32
    scf.if %2 {
      %cst_9 = arith.constant 0.000000e+00 : f32
      %15 = vector.broadcast %cst_9 : f32 to vector<256x128xf32>
      %c0_10 = arith.constant 0 : index
      %c0_11 = arith.constant 0 : index
      %16 = vector.load %arg6[%c0_10, %c0_11] : memref<256x128xf32, #tpu.memory_space<vmem>>, vector<256x128xf32>
      tpu.vector_store %arg6[%c0_10, %c0_11], %15 {strides = array<i32>} : memref<256x128xf32, #tpu.memory_space<vmem>>, vector<256x128xf32>,
    } else {
    }
    %c256_i32 = arith.constant 256 : i32
    %3 = arith.muli %arg1, %c256_i32 : i32
    %4 = tpu.assume_multiple %3, 128 : i32
    %c0 = arith.constant 0 : index
    %c0_1 = arith.constant 0 : index
    %5 = vector.load %arg6[%c0, %c0_1] : memref<256x128xf32, #tpu.memory_space<vmem>>, vector<256x128xf32>
    %c0_2 = arith.constant 0 : index
    %c0_3 = arith.constant 0 : index
    %6 = vector.load %arg2[%c0_2, %c0_3] : memref<256x256xbf16, #tpu.memory_space<vmem>>, vector<256x256xbf16>
    %7 = arith.index_cast %4 : i32 to index
    %c0_4 = arith.constant 0 : index
    %8 = vector.load %arg3[%7, %c0_4] : memref<256x128xbf16, #tpu.memory_space<vmem>>, vector<256x128xbf16>
    %cst = arith.constant dense<0.000000e+00> : vector<256x128xf32>
    %9 = tpu.matmul %6, %8, %cst {dimension_numbers = #tpu.dot_dimension_numbers<[1], [0], [0], [1], [0, 0, 1, 1], [], []>} : vector<256x256xbf16>, vector<256x128xbf16>, vector<256x128xf32> -> vector<256x128xf32>
    %10 = arith.addf %5, %9 : vector<256x128xf32>
    %c0_5 = arith.constant 0 : index
    %c0_6 = arith.constant 0 : index
    %11 = vector.load %arg6[%c0_5, %c0_6] : memref<256x128xf32, #tpu.memory_space<vmem>>, vector<256x128xf32>
    tpu.vector_store %arg6[%c0_5, %c0_6], %10 {strides = array<i32>} : memref<256x128xf32, #tpu.memory_space<vmem>>, vector<256x128xf32>,
    %c0_i32_7 = arith.constant 0 : i32
    %12 = arith.cmpi eq, %arg1, %c0_i32_7 : i32
    %13 = arith.extui %12 : i1 to i32
    %c0_i32_8 = arith.constant 0 : i32
    %14 = arith.cmpi ne, %13, %c0_i32_8 : i32
    scf.if %14 {
      %c0_9 = arith.constant 0 : index
      %c0_10 = arith.constant 0 : index
      %15 = vector.load %arg6[%c0_9, %c0_10] : memref<256x128xf32, #tpu.memory_space<vmem>>, vector<256x128xf32>
      %cst_11 = arith.constant 0.000000e+00 : f32
      %16 = vector.broadcast %cst_11 : f32 to vector<256x128xf32>
      %17 = arith.maximumf %15, %16 : vector<256x128xf32>
      %18 = arith.truncf %17 : vector<256x128xf32> to vector<256x128xbf16>
      %c0_12 = arith.constant 0 : index
      %c0_13 = arith.constant 0 : index
      %19 = vector.load %arg4[%c0_12, %c0_13] : memref<128x128xbf16, #tpu.memory_space<vmem>>, vector<128x128xbf16>
      %cst_14 = arith.constant dense<0.000000e+00> : vector<256x128xf32>
      %20 = tpu.matmul %18, %19, %cst_14 {dimension_numbers = #tpu.dot_dimension_numbers<[1], [0], [0], [1], [0, 0, 1, 1], [], []>} : vector<256x128xbf16>, vector<128x128xbf16>, vector<256x128xf32> -> vector<256x128xf32>
      %21 = arith.truncf %20 : vector<256x128xf32> to vector<256x128xbf16>
      %c0_15 = arith.constant 0 : index
      %c0_16 = arith.constant 0 : index
      %22 = vector.load %arg5[%c0_15, %c0_16] : memref<256x128xbf16, #tpu.memory_space<vmem>>, vector<256x128xbf16>
      tpu.vector_store %arg5[%c0_15, %c0_16], %21 {strides = array<i32>} : memref<256x128xbf16, #tpu.memory_space<vmem>>, vector<256x128xbf16>,
    } else {
    }
    return
  }
  func.func @transform_0(%arg0: i32, %arg1: i32) -> (i32, i32) {
    %c0_i32 = arith.constant 0 : i32
    return %arg0, %arg1 : i32, i32
  }
  func.func @transform_1(%arg0: i32, %arg1: i32) -> (i32, i32) {
    %c0_i32 = arith.constant 0 : i32
    %c0_i32_0 = arith.constant 0 : i32
    %c0_i32_1 = arith.constant 0 : i32
    return %c0_i32, %c0_i32_0 : i32, i32
  }
  func.func @transform_2(%arg0: i32, %arg1: i32) -> (i32, i32) {
    %c0_i32 = arith.constant 0 : i32
    %c0_i32_0 = arith.constant 0 : i32
    %c0_i32_1 = arith.constant 0 : i32
    return %c0_i32, %c0_i32_0 : i32, i32
  }
  func.func @transform_3(%arg0: i32, %arg1: i32) -> (i32, i32) {
    %c0_i32 = arith.constant 0 : i32
    %c0_i32_0 = arith.constant 0 : i32
    return %arg0, %c0_i32 : i32, i32
  }
}

</mosaic_0001>

<bundles_post_ra>
// kernel: tpu_custom_call.1
= control target key start
LH: loop header
LB: loop body
LE: loop exit
PB: predicated region body
PF: predicated region fallthrough
CT: control target
= control target key end

     0   :  { %8 = vsyncpa [#allocation4], 0  ;;  %s1849_s0 = inlined_call_operand.hbm [shape: bf16[256,256], index: 0, kind: input, shape index: {}]   ;;  %s1850_s1 = inlined_call_operand.hbm [shape: bf16[256,128], index: 1, kind: input, shape index: {}]   ;;  %s1851_s2 = inlined_call_operand.hbm [shape: bf16[128,128], index: 2, kind: input, shape index: {}]   ;;  %s1852_s3 = inlined_call_operand.hbm [shape: bf16[256,128], index: 3, kind: output, shape index: {}]  }
   0x1   :  { %9 = vsyncpa [#allocation7], 0 }
   0x2   :  { %10 = vsyncpa [#allocation5], 0  ;;  %s1752_s12 = smov [#allocation6]   ;;  %s1658_s16 = scalar_lea.hbm %s1850_s1, 2048 }
   0x3   :  { %s28_s13 = sshll.u32 %s1752_s12, 4  ;;  %p1659_p0 = scmp.ne.s32.totalorder %s1850_s1, %s1658_s16  ;;  %s29_s13 = int_to_ptr.vmem [resolvable:$true] %s28_s13 }
   0x4   :  { %p1662_p1 = scmp.lt.u32.totalorder %s1658_s16, %s1850_s1 }
   0x6   :  { %p1664_p2 = pnand %p1662_p1, %p1659_p0 }
   0x8   :  { %1667 = shalt.err (!%p1664_p2)
}
   0x9   :  { %s1668_s21 = scalar_lea.vmem %s29_s13, 2048  ;;  %p1673_p4 = scmp.lt.s32.totalorder %s29_s13, %s29_s13 }
   0xa   :  { %p1669_p3 = scmp.ne.s32.totalorder %s29_s13, %s1668_s21  ;;  %p1674_p5 = scmp.lt.s32.totalorder %s1668_s21, %s1668_s21 }
   0xc   :  { %p1675_p6 = por %p1674_p5, %p1673_p4 }
   0xe   :  { %p1676_p7 = pnand %p1675_p6, %p1669_p3 }
  0x10   :  { %1679 = shalt.err (!%p1676_p7)
}
  0x11   :  { %s1753_s22 = smov 64   ;;  %s1754_s23 = smov 4  }
  0x12   :  { %34 = dma.hbm_to_vmem [thread:$0]  %s1850_s1, 2048, %s29_s13, [#allocation7], %s1753_s22, %s1753_s22, %s1754_s23  }
  0x13   :  { %s1755_s26 = smov [#allocation3]   ;;  %s1680_s30 = scalar_lea.hbm %s1849_s0, 4096 }
  0x14   :  { %s16_s27 = sshll.u32 %s1755_s26, 4  ;;  %p1681_p8 = scmp.ne.s32.totalorder %s1849_s0, %s1680_s30  ;;  %s17_s27 = int_to_ptr.vmem [resolvable:$true] %s16_s27 }
  0x15   :  { %p1684_p9 = scmp.lt.u32.totalorder %s1680_s30, %s1849_s0 }
  0x17   :  { %p1686_p10 = pnand %p1684_p9, %p1681_p8 }
  0x19   :  { %1689 = shalt.err (!%p1686_p10)
}
  0x1a   :  { %s1690_s8 = scalar_lea.vmem %s17_s27, 4096  ;;  %p1695_p12 = scmp.lt.s32.totalorder %s17_s27, %s17_s27 }
  0x1b   :  { %p1691_p11 = scmp.ne.s32.totalorder %s17_s27, %s1690_s8  ;;  %p1696_p13 = scmp.lt.s32.totalorder %s1690_s8, %s1690_s8 }
  0x1d   :  { %p1697_p0 = por %p1696_p13, %p1695_p12 }
  0x1f   :  { %p1698_p1 = pnand %p1697_p0, %p1691_p11 }
  0x21   :  { %1701 = shalt.err (!%p1698_p1)
}
  0x22   :  { %s1756_s1 = smov 128   ;;  %s1757_s9 = smov 8  }
  0x23   :  { %22 = dma.hbm_to_vmem [thread:$0]  %s1849_s0, 4096, %s17_s27, [#allocation4], %s1756_s1, %s1756_s1, %s1757_s9  }
  0x24   :  { %s1758_s12 = smov [#allocation8]   ;;  %s1702_s16 = scalar_lea.hbm %s1851_s2, 1024 }
  0x25   :  { %s40_s13 = sshll.u32 %s1758_s12, 4  ;;  %p1703_p2 = scmp.ne.s32.totalorder %s1851_s2, %s1702_s16  ;;  %s41_s13 = int_to_ptr.vmem [resolvable:$true] %s40_s13 }
  0x26   :  { %p1706_p3 = scmp.lt.u32.totalorder %s1702_s16, %s1851_s2 }
  0x28   :  { %p1708_p4 = pnand %p1706_p3, %p1703_p2 }
  0x2a   :  { %1711 = shalt.err (!%p1708_p4)
}
  0x2b   :  { %s1712_s21 = scalar_lea.vmem %s41_s13, 1024  ;;  %p1717_p6 = scmp.lt.s32.totalorder %s41_s13, %s41_s13 }
  0x2c   :  { %p1713_p5 = scmp.ne.s32.totalorder %s41_s13, %s1712_s21  ;;  %p1718_p7 = scmp.lt.s32.totalorder %s1712_s21, %s1712_s21 }
  0x2e   :  { %p1719_p8 = por %p1718_p7, %p1717_p6 }
  0x30   :  { %p1720_p9 = pnand %p1719_p8, %p1713_p5 }
  0x32   :  { %1723 = shalt.err (!%p1720_p9)
}
  0x33   :  { %46 = dma.hbm_to_vmem [thread:$0]  %s1851_s2, 1024, %s41_s13, [#allocation7], %s1753_s22, %s1753_s22, %s1754_s23  }
  0x34   :  { %1746 = dma.done.wait [#allocation4], 4096  }
  0x35   :  { %1747 = vsyncadd [#allocation4], 4294963200 }
  0x36   :  { %1748 = dma.done.wait [#allocation7], 3072  }
  0x37   :  { %1749 = vsyncadd [#allocation7], 4294964224  ;;  %v1586_v0 = vld [vmem:[#allocation6 + $0x40] sm:$0xff]   ;;  %v1588_v2 = vld [vmem:[#allocation6 + $0x48] sm:$0xff]   ;;  %s1759_s2 = smov [#allocation9]  }
  0x38   :  { %v1587_v1 = vld [vmem:[#allocation6] sm:$0xff]   ;;  %1378 = vmatprep.subr.bf16.mxu0 %v1586_v0  ;;  %1562 = vmatprep.subr.bf16.mxu1 %v1586_v0  ;;  %v1589_v3 = vld [vmem:[#allocation6 + $0x8] sm:$0xff]   ;;  %v1590_v4 = vld [vmem:[#allocation6 + $0x50] sm:$0xff]   ;;  %s1148_s25 = sshll.u32 %s1759_s2, 4  ;;  %s1149_s25 = int_to_ptr.vmem [resolvable:$true] %s1148_s25 }
  0x39   :  { %1379 = vmatpush3.bf16.msra.mxu0 %v1587_v1  ;;  %1570 = vmatpush3.bf16.msra.mxu1 %v1587_v1  ;;  %v1591_v5 = vld [vmem:[#allocation6 + $0x10] sm:$0xff]   ;;  %v1592_v6 = vld [vmem:[#allocation6 + $0x58] sm:$0xff]   ;;  %v1594_v8 = vld [vmem:[#allocation6 + $0x60] sm:$0xff]   ;;  %s1724_s26 = scalar_lea.vmem %s1149_s25, 2048  ;;  %p1729_p11 = scmp.lt.s32.totalorder %s1149_s25, %s1149_s25 }
  0x3a   :  { %1380 = vmatprep.subr.bf16.mxu0 %v1588_v2  ;;  %1563 = vmatprep.subr.bf16.mxu1 %v1588_v2  ;;  %v1593_v7 = vld [vmem:[#allocation6 + $0x18] sm:$0xff]   ;;  %v1595_v9 = vld [vmem:[#allocation6 + $0x20] sm:$0xff]   ;;  %v1596_v10 = vld [vmem:[#allocation6 + $0x68] sm:$0xff]   ;;  %p1725_p10 = scmp.ne.s32.totalorder %s1149_s25, %s1724_s26  ;;  %p1730_p12 = scmp.lt.s32.totalorder %s1724_s26, %s1724_s26 }
  0x3b   :  { %v1604_v11 = vld [vmem:[#allocation3 + $0x4] ss:$8 sps:$4 sm:$0xff]   ;;  %v1598_v13 = vld [vmem:[#allocation6 + $0x70] sm:$0xff]   ;;  %v1600_v15 = vld [vmem:[#allocation6 + $0x78] sm:$0xff]  }
  0x3c   :  { %v1597_v12 = vld [vmem:[#allocation6 + $0x28] sm:$0xff]   ;;  %482 = vmatprep.mubr.bf16.mxu0 %v1604_v11  ;;  %v1599_v14 = vld [vmem:[#allocation6 + $0x30] sm:$0xff]   ;;  %v1601_v16 = vld [vmem:[#allocation6 + $0x38] sm:$0xff]   ;;  %p1731_p13 = por %p1730_p12, %p1729_p11 }
  0x3d   :  { %1381 = vmatpush3.bf16.msra.mxu0 %v1589_v3  ;;  %1571 = vmatpush3.bf16.msra.mxu1 %v1589_v3  ;;  %v1602_v17 = vld [vmem:[#allocation3] ss:$8 sps:$4 sm:$0xff]   ;;  %v1634_v18 = vld [vmem:[#allocation3 + $0xc4] ss:$8 sps:$4 sm:$0xff]   ;;  %v1605_v19 = vld [vmem:[#allocation3 + $0x14] ss:$8 sps:$4 sm:$0xff]  }
  0x3e   :  { %1382 = vmatprep.subr.bf16.mxu0 %v1590_v4  ;;  %1564 = vmatprep.subr.bf16.mxu1 %v1590_v4  ;;  %v1632_v20 = vld [vmem:[#allocation3 + $0xc0] ss:$8 sps:$4 sm:$0xff]   ;;  %v1638_v21 = vld [vmem:[#allocation3 + $0xd4] ss:$8 sps:$4 sm:$0xff]   ;;  %v1607_v22 = vld [vmem:[#allocation3 + $0x10] ss:$8 sps:$4 sm:$0xff]   ;;  %p1732_p0 = pnand %p1731_p13, %p1725_p10 }
  0x3f   :  { %578 = vmatprep.mubr.bf16.mxu1 %v1634_v18  ;;  %v1608_v23 = vld [vmem:[#allocation3 + $0x24] ss:$8 sps:$4 sm:$0xff]   ;;  %v1640_v24 = vld [vmem:[#allocation3 + $0xd0] ss:$8 sps:$4 sm:$0xff]   ;;  %v1610_v29 = vld [vmem:[#allocation3 + $0x20] ss:$8 sps:$4 sm:$0xff]  }
  0x40   :  { %v1650_v25 = vld [vmem:[#allocation8] sm:$0xff]   ;;  %v1651_v26 = vld [vmem:[#allocation8 + $0x8] sm:$0xff]   ;;  %v1652_v28 = vld [vmem:[#allocation8 + $0x10] sm:$0xff]  }
  0x41   :  { %1383 = vmatpush3.bf16.msra.mxu0 %v1591_v5  ;;  %1572 = vmatpush3.bf16.msra.mxu1 %v1591_v5  ;;  %v1644_v27 = vld [vmem:[#allocation3 + $0xe4] ss:$8 sps:$4 sm:$0xff]   ;;  %v1653_v30 = vld [vmem:[#allocation8 + $0x18] sm:$0xff]   ;;  %v1646_v32 = vld [vmem:[#allocation3 + $0xe0] ss:$8 sps:$4 sm:$0xff]  }
  0x42   :  { %1384 = vmatprep.subr.bf16.mxu0 %v1592_v6  ;;  %1565 = vmatprep.subr.bf16.mxu1 %v1592_v6  ;;  %v1611_v31 = vld [vmem:[#allocation3 + $0x34] ss:$8 sps:$4 sm:$0xff]   ;;  %v1613_v34 = vld [vmem:[#allocation3 + $0x30] ss:$8 sps:$4 sm:$0xff]   ;;  %v1614_v35 = vld [vmem:[#allocation3 + $0x44] ss:$8 sps:$4 sm:$0xff]  }
  0x43   :  { %v1647_v33 = vld [vmem:[#allocation3 + $0xf4] ss:$8 sps:$4 sm:$0xff]   ;;  %v1649_v36 = vld [vmem:[#allocation3 + $0xf0] ss:$8 sps:$4 sm:$0xff]   ;;  %v1616_v37 = vld [vmem:[#allocation3 + $0x40] ss:$8 sps:$4 sm:$0xff]  }
  0x44   :  { %v1617_v38 = vld [vmem:[#allocation3 + $0x54] ss:$8 sps:$4 sm:$0xff]   ;;  %v1619_v39 = vld [vmem:[#allocation3 + $0x50] ss:$8 sps:$4 sm:$0xff]   ;;  %v1620_v40 = vld [vmem:[#allocation3 + $0x64] ss:$8 sps:$4 sm:$0xff]  }
  0x45   :  { %1385 = vmatpush3.bf16.msra.mxu0 %v1593_v7  ;;  %1573 = vmatpush3.bf16.msra.mxu1 %v1593_v7  ;;  %v1622_v41 = vld [vmem:[#allocation3 + $0x60] ss:$8 sps:$4 sm:$0xff]   ;;  %v1623_v42 = vld [vmem:[#allocation3 + $0x74] ss:$8 sps:$4 sm:$0xff]   ;;  %v1625_v43 = vld [vmem:[#allocation3 + $0x70] ss:$8 sps:$4 sm:$0xff]  }
  0x46   :  { %1386 = vmatprep.subr.bf16.mxu0 %v1594_v8  ;;  %1566 = vmatprep.subr.bf16.mxu1 %v1594_v8  ;;  %v1626_v44 = vld [vmem:[#allocation3 + $0x84] ss:$8 sps:$4 sm:$0xff]   ;;  %v1628_v45 = vld [vmem:[#allocation3 + $0x80] ss:$8 sps:$4 sm:$0xff]   ;;  %v1629_v46 = vld [vmem:[#allocation3 + $0x94] ss:$8 sps:$4 sm:$0xff]  }
  0x47   :  { %v1631_v47 = vld [vmem:[#allocation3 + $0x90] ss:$8 sps:$4 sm:$0xff]   ;;  %v1635_v48 = vld [vmem:[#allocation3 + $0xa4] ss:$8 sps:$4 sm:$0xff]   ;;  %v1637_v49 = vld [vmem:[#allocation3 + $0xa0] ss:$8 sps:$4 sm:$0xff]  }
  0x48   :  { %v1641_v50 = vld [vmem:[#allocation3 + $0xb4] ss:$8 sps:$4 sm:$0xff]   ;;  %v1654_v51 = vld [vmem:[#allocation8 + $0x20] sm:$0xff]   ;;  %v1643_v52 = vld [vmem:[#allocation3 + $0xb0] ss:$8 sps:$4 sm:$0xff]  }
  0x49   :  { %1387 = vmatpush3.bf16.msra.mxu0 %v1595_v9  ;;  %1574 = vmatpush3.bf16.msra.mxu1 %v1595_v9  ;;  %v1655_v53 = vld [vmem:[#allocation8 + $0x28] sm:$0xff]   ;;  %v1656_v54 = vld [vmem:[#allocation8 + $0x30] sm:$0xff]   ;;  %v1657_v55 = vld [vmem:[#allocation8 + $0x38] sm:$0xff]  }
  0x4a   :  { %1388 = vmatprep.subr.bf16.mxu0 %v1596_v10  ;;  %1567 = vmatprep.subr.bf16.mxu1 %v1596_v10 }
  0x4d   :  { %1389 = vmatpush3.bf16.msra.mxu0 %v1597_v12  ;;  %1575 = vmatpush3.bf16.msra.mxu1 %v1597_v12 }
  0x4e   :  { %1390 = vmatprep.subr.bf16.mxu0 %v1598_v13  ;;  %1568 = vmatprep.subr.bf16.mxu1 %v1598_v13 }
  0x51   :  { %1391 = vmatpush3.bf16.msra.mxu0 %v1599_v14  ;;  %1576 = vmatpush3.bf16.msra.mxu1 %v1599_v14 }
  0x52   :  { %1392 = vmatprep.subr.bf16.mxu0 %v1600_v15  ;;  %1569 = vmatprep.subr.bf16.mxu1 %v1600_v15 }
  0x55   :  { %1393 = vmatpush3.bf16.msra.mxu0 %v1601_v16  ;;  %1577 = vmatpush3.bf16.msra.mxu1 %v1601_v16 }
  0x56   :  { %1514 = vmatprep.subr.bf16.mxu1 %v1650_v25 }
  0x58   :  { %483 = vmatmul.mubr.bf16.vlgmr.msra.gmra.mrb[0].mxu0 %v1602_v17  ;;  %579 = vmatmul.mubr.bf16.vlgmr.msra.gmra.mrb[0].mxu1 %v1632_v20 }
  0x59   :  { %490 = vmatprep.mubr.bf16.mxu0 %v1605_v19  ;;  %586 = vmatprep.mubr.bf16.mxu1 %v1638_v21 }
  0x5a   :  { %1515 = vmatpush3.bf16.msra.mxu1 %v1650_v25 }
  0x5b   :  { %1516 = vmatprep.subr.bf16.mxu1 %v1651_v26 }
  0x5e   :  { %1517 = vmatpush3.bf16.msra.mxu1 %v1651_v26 }
  0x5f   :  { %1518 = vmatprep.subr.bf16.mxu1 %v1652_v28 }
  0x60   :  { %491 = vmatmul.mubr.bf16.gmra.mrb[4].mxu0 %v1607_v22  ;;  %587 = vmatmul.mubr.bf16.gmra.mrb[4].mxu1 %v1640_v24 }
  0x61   :  { %498 = vmatprep.mubr.bf16.mxu0 %v1608_v23  ;;  %594 = vmatprep.mubr.bf16.mxu1 %v1644_v27 }
  0x62   :  { %1519 = vmatpush3.bf16.msra.mxu1 %v1652_v28 }
  0x63   :  { %1520 = vmatprep.subr.bf16.mxu1 %v1653_v30 }
  0x66   :  { %1521 = vmatpush3.bf16.msra.mxu1 %v1653_v30 }
  0x67   :  { %1522 = vmatprep.subr.bf16.mxu1 %v1654_v51 }
  0x68   :  { %499 = vmatmul.mubr.bf16.gmra.mrb[8].mxu0 %v1610_v29  ;;  %595 = vmatmul.mubr.bf16.gmra.mrb[8].mxu1 %v1646_v32 }
  0x69   :  { %506 = vmatprep.mubr.bf16.mxu0 %v1611_v31  ;;  %602 = vmatprep.mubr.bf16.mxu1 %v1647_v33 }
  0x6a   :  { %1523 = vmatpush3.bf16.msra.mxu1 %v1654_v51 }
  0x6b   :  { %1524 = vmatprep.subr.bf16.mxu1 %v1655_v53 }
  0x6e   :  { %1525 = vmatpush3.bf16.msra.mxu1 %v1655_v53 }
  0x6f   :  { %1526 = vmatprep.subr.bf16.mxu1 %v1656_v54 }
  0x70   :  { %507 = vmatmul.mubr.bf16.gmra.mrb[12].mxu0 %v1613_v34  ;;  %603 = vmatmul.mubr.bf16.gmra.mrb[12].mxu1 %v1649_v36 }
  0x71   :  { %514 = vmatprep.mubr.bf16.mxu0 %v1614_v35 }
  0x72   :  { %1527 = vmatpush3.bf16.msra.mxu1 %v1656_v54 }
  0x73   :  { %1528 = vmatprep.subr.bf16.mxu1 %v1657_v55 }
  0x76   :  { %1529 = vmatpush3.bf16.msra.mxu1 %v1657_v55 }
  0x78   :  { %515 = vmatmul.mubr.bf16.gmra.mrb[16].mxu0 %v1616_v37 }
  0x79   :  { %522 = vmatprep.mubr.bf16.mxu0 %v1617_v38 }
  0x80   :  { %523 = vmatmul.mubr.bf16.gmra.mrb[20].mxu0 %v1619_v39 }
  0x81   :  { %530 = vmatprep.mubr.bf16.mxu0 %v1620_v40 }
  0x88   :  { %531 = vmatmul.mubr.bf16.gmra.mrb[24].mxu0 %v1622_v41 }
  0x89   :  { %538 = vmatprep.mubr.bf16.mxu0 %v1623_v42 }
  0x90   :  { %539 = vmatmul.mubr.bf16.gmra.mrb[28].mxu0 %v1625_v43 }
  0x91   :  { %546 = vmatprep.mubr.bf16.mxu0 %v1626_v44 }
  0x98   :  { %547 = vmatmul.mubr.bf16.gmra.mrb[32].mxu0 %v1628_v45 }
  0x99   :  { %554 = vmatprep.mubr.bf16.mxu0 %v1629_v46 }
  0xa0   :  { %555 = vmatmul.mubr.bf16.gmra.mrb[36].mxu0 %v1631_v47 }
  0xa1   :  { %562 = vmatprep.mubr.bf16.mxu0 %v1635_v48 }
  0xa8   :  { %563 = vmatmul.mubr.bf16.gmra.mrb[40].mxu0 %v1637_v49 }
  0xa9   :  { %570 = vmatprep.mubr.bf16.mxu0 %v1641_v50 }
  0xb0   :  { %571 = vmatmul.mubr.bf16.gmra.mrb[44].mxu0 %v1643_v52 }
 0x12b   :  { %v1394_v56 = vpop.f32.mrb[0].mxu0  ;;  %v1466_v58 = vpop.f32.mrb[0].mxu1 }
 0x12c   :  { %v1395_v57 = vpop.f32.mrb[1].mxu0  ;;  %v1467_v61 = vpop.f32.mrb[1].mxu1 }
 0x12d   :  { %v1396_v59 = vadd.f32 %v1395_v57, %v1394_v56  ;;  %v1397_v60 = vpop.f32.mrb[2].mxu0  ;;  %v1468_v63 = vadd.f32 %v1467_v61, %v1466_v58  ;;  %v1469_v0 = vpop.f32.mrb[2].mxu1 }
 0x12e   :  { %v1398_v62 = vpop.f32.mrb[3].mxu0  ;;  %v1470_v2 = vpop.f32.mrb[3].mxu1 }
 0x12f   :  { %v1399_v1 = vadd.f32 %v1398_v62, %v1397_v60  ;;  %v734_v3 = vmax.f32 %v1468_v63, 0.0  ;;  %v1471_v4 = vadd.f32 %v1470_v2, %v1469_v0  ;;  %v710_v5 = vmax.f32 %v1396_v59, 0.0 }
 0x131   :  { %v711_v6 = vmax.f32 %v1399_v1, 0.0  ;;  %v735_v7 = vmax.f32 %v1471_v4, 0.0 }
 0x133   :  { %v742_v8 = vpack.c.bf16 %v711_v6, %v710_v5  ;;  %v1400_v9 = vpop.f32.mrb[4].mxu0  ;;  %v1822_v11 = vpack.c.bf16 %v735_v7, %v734_v3  ;;  %v1472_v12 = vpop.f32.mrb[4].mxu1 }
 0x134   :  { %v1401_v10 = vpop.f32.mrb[5].mxu0  ;;  %v1473_v15 = vpop.f32.mrb[5].mxu1 }
 0x135   :  { %v1402_v13 = vadd.f32 %v1401_v10, %v1400_v9  ;;  %v1403_v14 = vpop.f32.mrb[6].mxu0  ;;  %1530 = vmatprep.mubr.bf16.mxu1 %v742_v8  ;;  %v1474_v17 = vadd.f32 %v1473_v15, %v1472_v12  ;;  %v1475_v18 = vpop.f32.mrb[6].mxu1 }
 0x136   :  { %v1404_v16 = vpop.f32.mrb[7].mxu0  ;;  %v1476_v20 = vpop.f32.mrb[7].mxu1 }
 0x137   :  { %v1405_v19 = vadd.f32 %v1404_v16, %v1403_v14  ;;  %v736_v21 = vmax.f32 %v1474_v17, 0.0  ;;  %v1477_v22 = vadd.f32 %v1476_v20, %v1475_v18  ;;  %v712_v23 = vmax.f32 %v1402_v13, 0.0 }
 0x139   :  { %v713_v24 = vmax.f32 %v1405_v19, 0.0  ;;  %v737_v25 = vmax.f32 %v1477_v22, 0.0 }
 0x13b   :  { %v743_v26 = vpack.c.bf16 %v713_v24, %v712_v23  ;;  %v1406_v27 = vpop.f32.mrb[8].mxu0  ;;  %v1824_v29 = vpack.c.bf16 %v737_v25, %v736_v21  ;;  %v1478_v30 = vpop.f32.mrb[8].mxu1 }
 0x13c   :  { %v1407_v28 = vpop.f32.mrb[9].mxu0  ;;  %v1479_v33 = vpop.f32.mrb[9].mxu1 }
 0x13d   :  { %v1408_v31 = vadd.f32 %v1407_v28, %v1406_v27  ;;  %v1409_v32 = vpop.f32.mrb[10].mxu0  ;;  %1531 = vmatmul.mubr.bf16.vlgmr.msra.gmra.mrb[16].mxu1 %v743_v26  ;;  %v1480_v35 = vadd.f32 %v1479_v33, %v1478_v30  ;;  %v1481_v36 = vpop.f32.mrb[10].mxu1 }
 0x13e   :  { %v1410_v34 = vpop.f32.mrb[11].mxu0  ;;  %v1482_v38 = vpop.f32.mrb[11].mxu1 }
 0x13f   :  { %v1411_v37 = vadd.f32 %v1410_v34, %v1409_v32  ;;  %v738_v39 = vmax.f32 %v1480_v35, 0.0  ;;  %v1483_v40 = vadd.f32 %v1482_v38, %v1481_v36  ;;  %v714_v41 = vmax.f32 %v1408_v31, 0.0 }
 0x141   :  { %v715_v42 = vmax.f32 %v1411_v37, 0.0  ;;  %v739_v43 = vmax.f32 %v1483_v40, 0.0 }
 0x143   :  { %v744_v44 = vpack.c.bf16 %v715_v42, %v714_v41  ;;  %v1412_v45 = vpop.f32.mrb[12].mxu0  ;;  %v1826_v47 = vpack.c.bf16 %v739_v43, %v738_v39  ;;  %v1484_v48 = vpop.f32.mrb[12].mxu1 }
 0x144   :  { %v1413_v46 = vpop.f32.mrb[13].mxu0  ;;  %v1485_v51 = vpop.f32.mrb[13].mxu1 }
 0x145   :  { %v1414_v49 = vadd.f32 %v1413_v46, %v1412_v45  ;;  %v1415_v50 = vpop.f32.mrb[14].mxu0  ;;  %1534 = vmatprep.mubr.bf16.mxu1 %v744_v44  ;;  %v1486_v53 = vadd.f32 %v1485_v51, %v1484_v48  ;;  %v1487_v54 = vpop.f32.mrb[14].mxu1 }
 0x146   :  { %v1416_v52 = vpop.f32.mrb[15].mxu0  ;;  %v1488_v56 = vpop.f32.mrb[15].mxu1 }
 0x147   :  { %v1417_v55 = vadd.f32 %v1416_v52, %v1415_v50  ;;  %v740_v57 = vmax.f32 %v1486_v53, 0.0  ;;  %v1489_v58 = vadd.f32 %v1488_v56, %v1487_v54  ;;  %v716_v59 = vmax.f32 %v1414_v49, 0.0 }
 0x149   :  { %v717_v60 = vmax.f32 %v1417_v55, 0.0  ;;  %v741_v61 = vmax.f32 %v1489_v58, 0.0 }
 0x14b   :  { %v745_v62 = vpack.c.bf16 %v717_v60, %v716_v59  ;;  %v1418_v63 = vpop.f32.mrb[16].mxu0  ;;  %v1828_v1 = vpack.c.bf16 %v741_v61, %v740_v57 }
 0x14c   :  { %v1419_v0 = vpop.f32.mrb[17].mxu0 }
 0x14d   :  { %v1420_v2 = vadd.f32 %v1419_v0, %v1418_v63  ;;  %v1421_v3 = vpop.f32.mrb[18].mxu0  ;;  %1535 = vmatmul.mubr.bf16.gmra.mrb[20].mxu1 %v745_v62 }
 0x14e   :  { %v1422_v4 = vpop.f32.mrb[19].mxu0 }
 0x14f   :  { %v1423_v5 = vadd.f32 %v1422_v4, %v1421_v3  ;;  %v718_v6 = vmax.f32 %v1420_v2, 0.0 }
 0x151   :  { %v719_v7 = vmax.f32 %v1423_v5, 0.0 }
 0x153   :  { %v746_v8 = vpack.c.bf16 %v719_v7, %v718_v6  ;;  %v1424_v9 = vpop.f32.mrb[20].mxu0 }
 0x154   :  { %v1425_v10 = vpop.f32.mrb[21].mxu0 }
 0x155   :  { %v1426_v12 = vadd.f32 %v1425_v10, %v1424_v9  ;;  %v1427_v13 = vpop.f32.mrb[22].mxu0  ;;  %1538 = vmatprep.mubr.bf16.mxu1 %v746_v8 }
 0x156   :  { %v1428_v14 = vpop.f32.mrb[23].mxu0 }
 0x157   :  { %v1429_v15 = vadd.f32 %v1428_v14, %v1427_v13  ;;  %v720_v16 = vmax.f32 %v1426_v12, 0.0 }
 0x159   :  { %v721_v17 = vmax.f32 %v1429_v15, 0.0 }
 0x15b   :  { %v747_v18 = vpack.c.bf16 %v721_v17, %v720_v16  ;;  %v1430_v19 = vpop.f32.mrb[24].mxu0 }
 0x15c   :  { %v1431_v20 = vpop.f32.mrb[25].mxu0 }
 0x15d   :  { %v1432_v21 = vadd.f32 %v1431_v20, %v1430_v19  ;;  %v1433_v22 = vpop.f32.mrb[26].mxu0  ;;  %1539 = vmatmul.mubr.bf16.gmra.mrb[24].mxu1 %v747_v18 }
 0x15e   :  { %v1434_v23 = vpop.f32.mrb[27].mxu0 }
 0x15f   :  { %v1435_v24 = vadd.f32 %v1434_v23, %v1433_v22  ;;  %v722_v25 = vmax.f32 %v1432_v21, 0.0 }
 0x161   :  { %v723_v26 = vmax.f32 %v1435_v24, 0.0 }
 0x163   :  { %v748_v27 = vpack.c.bf16 %v723_v26, %v722_v25  ;;  %v1436_v28 = vpop.f32.mrb[28].mxu0 }
 0x164   :  { %v1437_v30 = vpop.f32.mrb[29].mxu0 }
 0x165   :  { %v1438_v31 = vadd.f32 %v1437_v30, %v1436_v28  ;;  %v1439_v32 = vpop.f32.mrb[30].mxu0  ;;  %1542 = vmatprep.mubr.bf16.mxu1 %v748_v27 }
 0x166   :  { %v1440_v33 = vpop.f32.mrb[31].mxu0 }
 0x167   :  { %v1441_v34 = vadd.f32 %v1440_v33, %v1439_v32  ;;  %v724_v35 = vmax.f32 %v1438_v31, 0.0 }
 0x169   :  { %v725_v36 = vmax.f32 %v1441_v34, 0.0 }
 0x16b   :  { %v749_v37 = vpack.c.bf16 %v725_v36, %v724_v35  ;;  %v1442_v38 = vpop.f32.mrb[32].mxu0 }
 0x16c   :  { %v1443_v39 = vpop.f32.mrb[33].mxu0 }
 0x16d   :  { %v1444_v40 = vadd.f32 %v1443_v39, %v1442_v38  ;;  %v1445_v41 = vpop.f32.mrb[34].mxu0  ;;  %1543 = vmatmul.mubr.bf16.gmra.mrb[28].mxu1 %v749_v37 }
 0x16e   :  { %v1446_v42 = vpop.f32.mrb[35].mxu0 }
 0x16f   :  { %v1447_v43 = vadd.f32 %v1446_v42, %v1445_v41  ;;  %v726_v44 = vmax.f32 %v1444_v40, 0.0 }
 0x171   :  { %v727_v45 = vmax.f32 %v1447_v43, 0.0 }
 0x173   :  { %v750_v46 = vpack.c.bf16 %v727_v45, %v726_v44  ;;  %v1448_v48 = vpop.f32.mrb[36].mxu0 }
 0x174   :  { %v1449_v49 = vpop.f32.mrb[37].mxu0 }
 0x175   :  { %v1450_v50 = vadd.f32 %v1449_v49, %v1448_v48  ;;  %v1451_v51 = vpop.f32.mrb[38].mxu0  ;;  %1546 = vmatprep.mubr.bf16.mxu1 %v750_v46 }
 0x176   :  { %v1452_v52 = vpop.f32.mrb[39].mxu0 }
 0x177   :  { %v1453_v53 = vadd.f32 %v1452_v52, %v1451_v51  ;;  %v728_v54 = vmax.f32 %v1450_v50, 0.0 }
 0x179   :  { %v729_v55 = vmax.f32 %v1453_v53, 0.0 }
 0x17b   :  { %v751_v56 = vpack.c.bf16 %v729_v55, %v728_v54  ;;  %v1454_v57 = vpop.f32.mrb[40].mxu0 }
 0x17c   :  { %v1455_v58 = vpop.f32.mrb[41].mxu0 }
 0x17d   :  { %v1456_v59 = vadd.f32 %v1455_v58, %v1454_v57  ;;  %v1457_v60 = vpop.f32.mrb[42].mxu0  ;;  %1547 = vmatmul.mubr.bf16.gmra.mrb[32].mxu1 %v751_v56 }
 0x17e   :  { %v1458_v61 = vpop.f32.mrb[43].mxu0 }
 0x17f   :  { %v1459_v62 = vadd.f32 %v1458_v61, %v1457_v60  ;;  %v730_v63 = vmax.f32 %v1456_v59, 0.0 }
 0x181   :  { %v731_v0 = vmax.f32 %v1459_v62, 0.0 }
 0x183   :  { %v752_v2 = vpack.c.bf16 %v731_v0, %v730_v63  ;;  %v1460_v3 = vpop.f32.mrb[44].mxu0 }
 0x184   :  { %v1461_v4 = vpop.f32.mrb[45].mxu0 }
 0x185   :  { %v1462_v5 = vadd.f32 %v1461_v4, %v1460_v3  ;;  %v1463_v6 = vpop.f32.mrb[46].mxu0  ;;  %1550 = vmatprep.mubr.bf16.mxu1 %v752_v2 }
 0x186   :  { %v1464_v7 = vpop.f32.mrb[47].mxu0 }
 0x187   :  { %v1465_v8 = vadd.f32 %v1464_v7, %v1463_v6  ;;  %v732_v9 = vmax.f32 %v1462_v5, 0.0 }
 0x189   :  { %v733_v10 = vmax.f32 %v1465_v8, 0.0 }
 0x18b   :  { %v753_v12 = vpack.c.bf16 %v733_v10, %v732_v9 }
 0x18d   :  { %1551 = vmatmul.mubr.bf16.gmra.mrb[36].mxu1 %v753_v12 }
 0x18e   :  { %1554 = vmatprep.mubr.bf16.mxu1 %v1822_v11 }
 0x195   :  { %1555 = vmatmul.mubr.bf16.gmra.mrb[40].mxu1 %v1824_v29 }
 0x196   :  { %1558 = vmatprep.mubr.bf16.mxu1 %v1826_v47 }
 0x19d   :  { %1559 = vmatmul.mubr.bf16.gmra.mrb[44].mxu1 %v1828_v1 }
 0x210   :  { %v1532_v13 = vpop.f32.mrb[16].mxu1 }
 0x211   :  { %v856_v14 = vpop.f32.mrb[17].mxu1 }
 0x212   :  { %v1533_v15 = vpop.f32.mrb[18].mxu1 }
 0x213   :  { %v1291_v16 = vpack.c.bf16 %v1533_v15, %v1532_v13  ;;  %v859_v17 = vpop.f32.mrb[19].mxu1 }
 0x214   :  { %v1286_v18 = vpack.c.bf16 %v859_v17, %v856_v14 }
 0x215   :  { %1363 = vst [vmem:[#allocation9 + $0x8] sm:$0xff] %v1291_v16  }
 0x216   :  { %1287 = vst [vmem:[#allocation9] sm:$0xff] %v1286_v18  }
 0x220   :  { %v1536_v19 = vpop.f32.mrb[20].mxu1 }
 0x221   :  { %v872_v20 = vpop.f32.mrb[21].mxu1 }
 0x222   :  { %v1537_v21 = vpop.f32.mrb[22].mxu1 }
 0x223   :  { %v1301_v22 = vpack.c.bf16 %v1537_v21, %v1536_v19  ;;  %v875_v23 = vpop.f32.mrb[23].mxu1 }
 0x224   :  { %v1296_v11 = vpack.c.bf16 %v875_v23, %v872_v20 }
 0x225   :  { %1365 = vst [vmem:[#allocation9 + $0x18] sm:$0xff] %v1301_v22  }
 0x226   :  { %1364 = vst [vmem:[#allocation9 + $0x10] sm:$0xff] %v1296_v11  }
 0x230   :  { %v1540_v29 = vpop.f32.mrb[24].mxu1 }
 0x231   :  { %v888_v47 = vpop.f32.mrb[25].mxu1 }
 0x232   :  { %v1541_v24 = vpop.f32.mrb[26].mxu1 }
 0x233   :  { %v1311_v1 = vpack.c.bf16 %v1541_v24, %v1540_v29  ;;  %v891_v25 = vpop.f32.mrb[27].mxu1 }
 0x234   :  { %v1306_v26 = vpack.c.bf16 %v891_v25, %v888_v47 }
 0x235   :  { %1367 = vst [vmem:[#allocation9 + $0x28] sm:$0xff] %v1311_v1  }
 0x236   :  { %1366 = vst [vmem:[#allocation9 + $0x20] sm:$0xff] %v1306_v26  }
 0x240   :  { %v1544_v27 = vpop.f32.mrb[28].mxu1 }
 0x241   :  { %v904_v28 = vpop.f32.mrb[29].mxu1 }
 0x242   :  { %v1545_v30 = vpop.f32.mrb[30].mxu1 }
 0x243   :  { %v1321_v31 = vpack.c.bf16 %v1545_v30, %v1544_v27  ;;  %v907_v32 = vpop.f32.mrb[31].mxu1 }
 0x244   :  { %v1316_v33 = vpack.c.bf16 %v907_v32, %v904_v28 }
 0x245   :  { %1369 = vst [vmem:[#allocation9 + $0x38] sm:$0xff] %v1321_v31  }
 0x246   :  { %1368 = vst [vmem:[#allocation9 + $0x30] sm:$0xff] %v1316_v33  }
 0x250   :  { %v1548_v34 = vpop.f32.mrb[32].mxu1 }
 0x251   :  { %v920_v35 = vpop.f32.mrb[33].mxu1 }
 0x252   :  { %v1549_v36 = vpop.f32.mrb[34].mxu1 }
 0x253   :  { %v1331_v37 = vpack.c.bf16 %v1549_v36, %v1548_v34  ;;  %v923_v38 = vpop.f32.mrb[35].mxu1 }
 0x254   :  { %v1326_v39 = vpack.c.bf16 %v923_v38, %v920_v35 }
 0x255   :  { %1371 = vst [vmem:[#allocation9 + $0x48] sm:$0xff] %v1331_v37  }
 0x256   :  { %1370 = vst [vmem:[#allocation9 + $0x40] sm:$0xff] %v1326_v39  }
 0x260   :  { %v1552_v40 = vpop.f32.mrb[36].mxu1 }
 0x261   :  { %v936_v41 = vpop.f32.mrb[37].mxu1 }
 0x262   :  { %v1553_v42 = vpop.f32.mrb[38].mxu1 }
 0x263   :  { %v1341_v43 = vpack.c.bf16 %v1553_v42, %v1552_v40  ;;  %v939_v44 = vpop.f32.mrb[39].mxu1 }
 0x264   :  { %v1336_v45 = vpack.c.bf16 %v939_v44, %v936_v41 }
 0x265   :  { %1373 = vst [vmem:[#allocation9 + $0x58] sm:$0xff] %v1341_v43  }
 0x266   :  { %1372 = vst [vmem:[#allocation9 + $0x50] sm:$0xff] %v1336_v45  }
 0x268   :  { %v1556_v46 = vpop.f32.mrb[40].mxu1 }
 0x269   :  { %v952_v48 = vpop.f32.mrb[41].mxu1 }
 0x26a   :  { %v1557_v49 = vpop.f32.mrb[42].mxu1 }
 0x26b   :  { %v1351_v50 = vpack.c.bf16 %v1557_v49, %v1556_v46  ;;  %v955_v51 = vpop.f32.mrb[43].mxu1 }
 0x26c   :  { %v1346_v52 = vpack.c.bf16 %v955_v51, %v952_v48 }
 0x26d   :  { %1375 = vst [vmem:[#allocation9 + $0x68] sm:$0xff] %v1351_v50  }
 0x26e   :  { %1374 = vst [vmem:[#allocation9 + $0x60] sm:$0xff] %v1346_v52  }
 0x270   :  { %v1560_v53 = vpop.f32.mrb[44].mxu1 }
 0x271   :  { %v968_v54 = vpop.f32.mrb[45].mxu1 }
 0x272   :  { %v1561_v55 = vpop.f32.mrb[46].mxu1 }
 0x273   :  { %v1361_v56 = vpack.c.bf16 %v1561_v55, %v1560_v53  ;;  %v971_v57 = vpop.f32.mrb[47].mxu1 }
 0x274   :  { %v1356_v58 = vpack.c.bf16 %v971_v57, %v968_v54 }
 0x275   :  { %1377 = vst [vmem:[#allocation9 + $0x78] sm:$0xff] %v1361_v56  }
 0x276   :  { %1376 = vst [vmem:[#allocation9 + $0x70] sm:$0xff] %v1356_v58  }
 0x277   :  { %1735 = shalt.err (!%p1732_p0)
}
 0x278   :  { %s1736_s29 = scalar_lea.hbm %s1852_s3, 2048 }
 0x279   :  { %p1737_p1 = scmp.ne.s32.totalorder %s1852_s3, %s1736_s29  ;;  %p1740_p2 = scmp.lt.u32.totalorder %s1736_s29, %s1852_s3 }
 0x27b   :  { %p1742_p3 = pnand %p1740_p2, %p1737_p1 }
 0x27d   :  { %1745 = shalt.err (!%p1742_p3)
}
 0x27e   :  { %1154 = dma.vmem_to_hbm [thread:$0]  %s1149_s25, 2048, %s1852_s3, [#allocation5], %s1753_s22, %s1753_s22, %s1754_s23  }
 0x27f   :  { %1750 = dma.done.wait [#allocation5], 2048  }
 0x280   :  { %1751 = vsyncadd [#allocation5], 4294965248 }
 0x281   :  { %1158 = vsyncpa [#allocation4], 1 }
 0x282   :  { %1159 = vsyncpa [#allocation7], 1 }
 0x283   :  { %1160 = vsyncpa [#allocation5], 1 }

</bundles_post_ra>
